<compile_context>
chip_gen: v7x
topology: tpu7x:2x2x1
jax: 0.10.0
libtpu: 0.0.40
codegen_flags: <defaults>
</compile_context>

<pallas_src>
import functools

import jax
import jax.numpy as jnp
from jax.experimental import pallas as pl
from jax.experimental.pallas import tpu as pltpu

_LANE = 128
_SUBLANE = 8


def _round_up(x, m):
    return ((x + m - 1) // m) * m


def _apply_activation(y, activation):
    if activation == "relu":
        return jnp.maximum(y, 0.0)
    if activation == "leakyrelu":
        return jnp.where(y >= 0.0, y, 0.01 * y)
    if activation == "tanh":
        return jnp.tanh(y)
    if activation == "sigmoid":
        return jax.nn.sigmoid(y)
    return y  # activation in (None, 'None') -> identity


# ----------------------------- Pallas kernel -----------------------------

def _fused_mlp_kernel(*refs, num_layers, activation):
    # refs = [x_ref, (w_ref, scale_ref, shift_ref) * num_layers, o_ref]
    # x_ref:  (tm, D0p)            o_ref: (tm, DLp)
    # w_ref:  (Dinp, Doutp)        scale/shift: (1, Doutp) f32
    x_ref = refs[0]
    o_ref = refs[-1]
    h = x_ref[...]
    for l in range(num_layers):
        w_ref, scale_ref, shift_ref = refs[1 + 3 * l:4 + 3 * l]
        # Native-dtype operands straight into the MXU, f32 accumulation.
        y = jnp.dot(h.astype(w_ref.dtype), w_ref[...],
                    preferred_element_type=jnp.float32)
        y = y * scale_ref[...] + shift_ref[...]        # folded BatchNorm1d (eval)
        h = _apply_activation(y, activation)           # stays on-chip (vregs/VMEM)
    o_ref[...] = h.astype(o_ref.dtype)


# ----------------------------- Wrapper -----------------------------

def mlperceptron_forward(params, x, activation, *, tm=128):
    """Fused forward pass of MLPerceptron (mlp_type=None, dropout=0, eval BN).

    params: list of (W_T (Din, Dout), scale (Dout,), shift (Dout,)) per layer.
    x:      (B, D0)
    """
    B, D0 = x.shape
    num_layers = len(params)
    dims = [D0] + [w.shape[1] for (w, _, _) in params]
    dims_pad = [_round_up(d, _LANE) for d in dims]      # lane-dense widths

    B_pad = _round_up(B, _SUBLANE)
    tm = _round_up(min(tm, B_pad), _SUBLANE)
    B_pad = _round_up(B_pad, tm)

    # ---- pad input (zeros in extra feature cols / batch rows are harmless:
    #      padded weight rows/cols are zero and padded outputs get sliced off).
    x_pad = jnp.zeros((B_pad, dims_pad[0]), x.dtype).at[:B, :D0].set(x)

    flat_inputs = [x_pad]
    in_specs = [pl.BlockSpec((tm, dims_pad[0]), lambda i: (i, 0))]
    weight_bytes = 0
    for l, (w, scale, shift) in enumerate(params):
        din, dout = w.shape
        dinp, doutp = dims_pad[l], dims_pad[l + 1]
        w_p = jnp.zeros((dinp, doutp), w.dtype).at[:din, :dout].set(w)
        s_p = jnp.zeros((1, doutp), jnp.float32).at[0, :dout].set(scale)
        t_p = jnp.zeros((1, doutp), jnp.float32).at[0, :dout].set(shift)
        flat_inputs += [w_p, s_p, t_p]
        weight_bytes += w_p.size * w_p.dtype.itemsize + 2 * doutp * 4
        # Constant block index -> no re-DMA across grid steps (VMEM-resident).
        in_specs += [
            pl.BlockSpec((dinp, doutp), lambda i: (0, 0)),
            pl.BlockSpec((1, doutp), lambda i: (0, 0)),
            pl.BlockSpec((1, doutp), lambda i: (0, 0)),
        ]

    # Residency budget aimed at v7x's 64 MiB physical VMEM (weights + double-
    # buffered x/out tiles must fit); v5e/v6e (128 MiB) is strictly looser.
    if weight_bytes > 48 * 1024 * 1024:
        # TODO(synk): for layer stacks whose weights exceed VMEM, fall back to a
        # per-layer (tm,tn,tk)-tiled matmul kernel instead of the fused stack.
        raise ValueError("weights too large to keep VMEM-resident in fused kernel")

    out_dtype = x.dtype
    out_shape = jax.ShapeDtypeStruct((B_pad, dims_pad[-1]), out_dtype)
    out_spec = pl.BlockSpec((tm, dims_pad[-1]), lambda i: (i, 0))

    flops = 2 * B_pad * sum(dims_pad[l] * dims_pad[l + 1] for l in range(num_layers))
    transcendentals = (B_pad * sum(dims_pad[1:])
                       if activation in ("tanh", "sigmoid") else 0)
    bytes_accessed = (x_pad.size * x_pad.dtype.itemsize
                      + weight_bytes
                      + B_pad * dims_pad[-1] * jnp.dtype(out_dtype).itemsize)

    kernel = functools.partial(_fused_mlp_kernel,
                               num_layers=num_layers, activation=activation)
    out = pl.pallas_call(
        kernel,
        out_shape=out_shape,
        grid=(B_pad // tm,),
        in_specs=in_specs,
        out_specs=out_spec,
        compiler_params=pltpu.CompilerParams(
            # Batch tiles are independent -> megacore-shardable on v7x.
            dimension_semantics=("parallel",)),
        cost_estimate=pl.CostEstimate(flops=flops,
                                      transcendentals=transcendentals,
                                      bytes_accessed=bytes_accessed),
    )(*flat_inputs)
    return out[:B, :dims[-1]]


# ----------------------------- Parameter setup -----------------------------

def init_mlperceptron_params(key, layer_sizes, batch_norm=True, eps=1e-5):
    """Deterministic synthetic parameters matching the PyTorch module's shapes.

    For each (dim_in, dim_out):
      Linear:      weight (dim_out, dim_in), bias (dim_out,)
      BatchNorm1d: gamma, beta, running_mean, running_var  (dim_out,) each
    BN (eval) is folded: y = (x W^T) * scale + shift with
      scale = gamma / sqrt(var + eps),  shift = (b - mean) * scale + beta.
    Returns per-layer (W_T (dim_in, dim_out), scale (dim_out,), shift (dim_out,)).
    """
    params = []
    for dim_in, dim_out in zip(layer_sizes[:-1], layer_sizes[1:]):
        key, k_w, k_b, k_g, k_bt, k_m, k_v = jax.random.split(key, 7)
        bound = 1.0 / jnp.sqrt(jnp.float32(dim_in))
        W = jax.random.uniform(k_w, (dim_out, dim_in), jnp.float32, -bound, bound)
        b = jax.random.uniform(k_b, (dim_out,), jnp.float32, -bound, bound)
        if batch_norm:
            gamma = 1.0 + 0.1 * jax.random.normal(k_g, (dim_out,), jnp.float32)
            beta = 0.1 * jax.random.normal(k_bt, (dim_out,), jnp.float32)
            running_mean = 0.1 * jax.random.normal(k_m, (dim_out,), jnp.float32)
            running_var = 1.0 + 0.1 * jax.random.uniform(k_v, (dim_out,), jnp.float32)
        else:
            gamma = jnp.ones((dim_out,), jnp.float32)
            beta = jnp.zeros((dim_out,), jnp.float32)
            running_mean = jnp.zeros((dim_out,), jnp.float32)
            running_var = jnp.ones((dim_out,), jnp.float32)

        scale = gamma / jnp.sqrt(running_var + eps)
        shift = (b - running_mean) * scale + beta
        params.append((jnp.transpose(W), scale, shift))
    return params


# ----------------------------- Main -----------------------------

if __name__ == "__main__":
    # MLPerceptron(layer_sizes=[16, 32, 8], activation='relu', batch_norm=True,
    #              dropout=0, mlp_type=None)
    layer_sizes = [16, 32, 8]
    activation = "relu"
    batch = 64

    key = jax.random.PRNGKey(0)
    key, k_x, k_p = jax.random.split(key, 3)
    x = jax.random.normal(k_x, (batch, layer_sizes[0]), jnp.float32)
    params = init_mlperceptron_params(k_p, layer_sizes, batch_norm=True)

    # tm=32 -> 2 batch tiles to exercise the pipelined grid even at demo sizes.
    out = mlperceptron_forward(params, x, activation, tm=32)
    out = jax.block_until_ready(out)
    assert out.shape == (batch, layer_sizes[-1])

    # Pure-JAX reference of the fused semantics (Linear -> folded BN(eval) -> ReLU).
    ref = x
    for (w_t, scale, shift) in params:
        ref = jnp.maximum(ref @ w_t * scale[None, :] + shift[None, :], 0.0)
    assert jnp.allclose(out, ref, atol=1e-5, rtol=1e-5)

    print("KERNEL_OK")
</pallas_src>

<mosaic_0001>
module attributes {stable_mosaic.version = 11 : i64} {
  func.func @_fused_mlp_kernel(%arg0: i32, %arg1: memref<32x128xf32, #tpu.memory_space<vmem>>, %arg2: memref<128x128xf32, #tpu.memory_space<vmem>>, %arg3: memref<1x128xf32, #tpu.memory_space<vmem>>, %arg4: memref<1x128xf32, #tpu.memory_space<vmem>>, %arg5: memref<128x128xf32, #tpu.memory_space<vmem>>, %arg6: memref<1x128xf32, #tpu.memory_space<vmem>>, %arg7: memref<1x128xf32, #tpu.memory_space<vmem>>, %arg8: memref<32x128xf32, #tpu.memory_space<vmem>>) attributes {dimension_semantics = [#tpu.dimension_semantics<parallel>], iteration_bounds = array<i64: 2>, scalar_prefetch = 0 : i64, scratch_operands = 0 : i64, tpu.core_type = #tpu.core_type<tc>, window_params = [{transform_indices = @transform_0, window_bounds = array<i64: 32, 128>}, {pipeline_mode = #tpu.pipeline_mode<synchronous>, transform_indices = @transform_1, window_bounds = array<i64: 128, 128>}, {pipeline_mode = #tpu.pipeline_mode<synchronous>, transform_indices = @transform_2, window_bounds = array<i64: 1, 128>}, {pipeline_mode = #tpu.pipeline_mode<synchronous>, transform_indices = @transform_3, window_bounds = array<i64: 1, 128>}, {pipeline_mode = #tpu.pipeline_mode<synchronous>, transform_indices = @transform_4, window_bounds = array<i64: 128, 128>}, {pipeline_mode = #tpu.pipeline_mode<synchronous>, transform_indices = @transform_5, window_bounds = array<i64: 1, 128>}, {pipeline_mode = #tpu.pipeline_mode<synchronous>, transform_indices = @transform_6, window_bounds = array<i64: 1, 128>}, {transform_indices = @transform_7, window_bounds = array<i64: 32, 128>}]} {
    %c0 = arith.constant 0 : index
    %c0_0 = arith.constant 0 : index
    %0 = vector.load %arg1[%c0, %c0_0] : memref<32x128xf32, #tpu.memory_space<vmem>>, vector<32x128xf32>
    %c0_1 = arith.constant 0 : index
    %c0_2 = arith.constant 0 : index
    %1 = vector.load %arg2[%c0_1, %c0_2] : memref<128x128xf32, #tpu.memory_space<vmem>>, vector<128x128xf32>
    %cst = arith.constant dense<0.000000e+00> : vector<32x128xf32>
    %2 = tpu.matmul %0, %1, %cst {dimension_numbers = #tpu.dot_dimension_numbers<[1], [0], [0], [1], [0, 0, 1, 1], [], []>} : vector<32x128xf32>, vector<128x128xf32>, vector<32x128xf32> -> vector<32x128xf32>
    %c0_3 = arith.constant 0 : index
    %c0_4 = arith.constant 0 : index
    %3 = vector.load %arg3[%c0_3, %c0_4] : memref<1x128xf32, #tpu.memory_space<vmem>>, vector<1x128xf32>
    %4 = vector.broadcast %3 : vector<1x128xf32> to vector<32x128xf32>
    %5 = arith.mulf %2, %4 : vector<32x128xf32>
    %c0_5 = arith.constant 0 : index
    %c0_6 = arith.constant 0 : index
    %6 = vector.load %arg4[%c0_5, %c0_6] : memref<1x128xf32, #tpu.memory_space<vmem>>, vector<1x128xf32>
    %7 = vector.broadcast %6 : vector<1x128xf32> to vector<32x128xf32>
    %8 = arith.addf %5, %7 : vector<32x128xf32>
    %cst_7 = arith.constant 0.000000e+00 : f32
    %9 = vector.broadcast %cst_7 : f32 to vector<32x128xf32>
    %10 = arith.maximumf %8, %9 : vector<32x128xf32>
    %c0_8 = arith.constant 0 : index
    %c0_9 = arith.constant 0 : index
    %11 = vector.load %arg5[%c0_8, %c0_9] : memref<128x128xf32, #tpu.memory_space<vmem>>, vector<128x128xf32>
    %cst_10 = arith.constant dense<0.000000e+00> : vector<32x128xf32>
    %12 = tpu.matmul %10, %11, %cst_10 {dimension_numbers = #tpu.dot_dimension_numbers<[1], [0], [0], [1], [0, 0, 1, 1], [], []>} : vector<32x128xf32>, vector<128x128xf32>, vector<32x128xf32> -> vector<32x128xf32>
    %c0_11 = arith.constant 0 : index
    %c0_12 = arith.constant 0 : index
    %13 = vector.load %arg6[%c0_11, %c0_12] : memref<1x128xf32, #tpu.memory_space<vmem>>, vector<1x128xf32>
    %14 = vector.broadcast %13 : vector<1x128xf32> to vector<32x128xf32>
    %15 = arith.mulf %12, %14 : vector<32x128xf32>
    %c0_13 = arith.constant 0 : index
    %c0_14 = arith.constant 0 : index
    %16 = vector.load %arg7[%c0_13, %c0_14] : memref<1x128xf32, #tpu.memory_space<vmem>>, vector<1x128xf32>
    %17 = vector.broadcast %16 : vector<1x128xf32> to vector<32x128xf32>
    %18 = arith.addf %15, %17 : vector<32x128xf32>
    %cst_15 = arith.constant 0.000000e+00 : f32
    %19 = vector.broadcast %cst_15 : f32 to vector<32x128xf32>
    %20 = arith.maximumf %18, %19 : vector<32x128xf32>
    %c0_16 = arith.constant 0 : index
    %c0_17 = arith.constant 0 : index
    %21 = vector.load %arg8[%c0_16, %c0_17] : memref<32x128xf32, #tpu.memory_space<vmem>>, vector<32x128xf32>
    tpu.vector_store %arg8[%c0_16, %c0_17], %20 {strides = array<i32>} : memref<32x128xf32, #tpu.memory_space<vmem>>, vector<32x128xf32>,
    return
  }
  func.func @transform_0(%arg0: i32) -> (i32, i32) {
    %c0_i32 = arith.constant 0 : i32
    %c0_i32_0 = arith.constant 0 : i32
    return %arg0, %c0_i32 : i32, i32
  }
  func.func @transform_1(%arg0: i32) -> (i32, i32) {
    %c0_i32 = arith.constant 0 : i32
    %c0_i32_0 = arith.constant 0 : i32
    %c0_i32_1 = arith.constant 0 : i32
    return %c0_i32, %c0_i32_0 : i32, i32
  }
  func.func @transform_2(%arg0: i32) -> (i32, i32) {
    %c0_i32 = arith.constant 0 : i32
    %c0_i32_0 = arith.constant 0 : i32
    %c0_i32_1 = arith.constant 0 : i32
    return %c0_i32, %c0_i32_0 : i32, i32
  }
  func.func @transform_3(%arg0: i32) -> (i32, i32) {
    %c0_i32 = arith.constant 0 : i32
    %c0_i32_0 = arith.constant 0 : i32
    %c0_i32_1 = arith.constant 0 : i32
    return %c0_i32, %c0_i32_0 : i32, i32
  }
  func.func @transform_4(%arg0: i32) -> (i32, i32) {
    %c0_i32 = arith.constant 0 : i32
    %c0_i32_0 = arith.constant 0 : i32
    %c0_i32_1 = arith.constant 0 : i32
    return %c0_i32, %c0_i32_0 : i32, i32
  }
  func.func @transform_5(%arg0: i32) -> (i32, i32) {
    %c0_i32 = arith.constant 0 : i32
    %c0_i32_0 = arith.constant 0 : i32
    %c0_i32_1 = arith.constant 0 : i32
    return %c0_i32, %c0_i32_0 : i32, i32
  }
  func.func @transform_6(%arg0: i32) -> (i32, i32) {
    %c0_i32 = arith.constant 0 : i32
    %c0_i32_0 = arith.constant 0 : i32
    %c0_i32_1 = arith.constant 0 : i32
    return %c0_i32, %c0_i32_0 : i32, i32
  }
  func.func @transform_7(%arg0: i32) -> (i32, i32) {
    %c0_i32 = arith.constant 0 : i32
    %c0_i32_0 = arith.constant 0 : i32
    return %arg0, %c0_i32 : i32, i32
  }
}

</mosaic_0001>

<bundles_post_ra>
// kernel: tpu_custom_call.1
= control target key start
LH: loop header
LB: loop body
LE: loop exit
PB: predicated region body
PF: predicated region fallthrough
CT: control target
= control target key end

     0   :  { %12 = vsyncpa [#allocation3], 0  ;;  %s1442_s0 = inlined_call_operand.hbm [shape: f32[64,128], index: 0, kind: input, shape index: {}]   ;;  %s1443_s1 = inlined_call_operand.hbm [shape: f32[128,128], index: 1, kind: input, shape index: {}]   ;;  %s1444_s2 = inlined_call_operand.vmem [shape: f32[1,128], index: 2, kind: input, shape index: {}]   ;;  %s1445_s3 = inlined_call_operand.vmem [shape: f32[1,128], index: 3, kind: input, shape index: {}]   ;;  %s1446_s4 = inlined_call_operand.hbm [shape: f32[128,128], index: 4, kind: input, shape index: {}]   ;;  %s1447_s5 = inlined_call_operand.vmem [shape: f32[1,128], index: 5, kind: input, shape index: {}]   ;;  %s1448_s6 = inlined_call_operand.vmem [shape: f32[1,128], index: 6, kind: input, shape index: {}]   ;;  %s1449_s7 = inlined_call_operand.hbm [shape: f32[64,128], index: 7, kind: output, shape index: {}]  }
   0x1   :  { %14 = vsyncpa [#allocation3 + $0x1], 0 }
   0x2   :  { %15 = vsyncpa [#allocation6], 0 }
   0x3   :  { %16 = vsyncpa [#allocation4], 0 }
   0x4   :  { %18 = vsyncpa [#allocation4 + $0x1], 0  ;;  %s1177_s24 = smov 0   ;;  %s1179_s25 = smov 0  }
   0x5   :  { %s1181_s26 = smov 0   ;;  %s1183_s27 = smov 0  }
   0x6 LB: > { %s1198_s28 = sadd.s32 4294967295, %s1127_s27   ;;  %s696_s29 = sadd.s32 4294967294, %s1127_s27   ;;  %s1127_s27 = sphi %s1183_s27, %s1471_s27   ;;  %s1123_s26 = sphi %s1181_s26, %s1470_s26   ;;  %s1119_s25 = sphi %s1179_s25, %s1469_s25   ;;  %s1115_s24 = sphi %s1177_s24, %s1468_s24  }
   0x7   : > { %p44_p0 = scmp.ne.s32.totalorder %s1119_s25, %s1115_s24  ;;  %p1450_p1 = scmp.eq.s32.totalorder %s1198_s28, 0 }
   0x8   : > { %p200_p3 = scmp.eq.s32.totalorder %s696_s29, 1  ;;  %p697_p5 = scmp.ge.s32.totalorder %s1127_s27, 1 }
   0x9   : > { %p1207_p4 = por %p1450_p1, %p44_p0  ;;  %p207_p7 = scmp.lt.s32.totalorder %s1127_s27, 3 }
   0xa   : > { %p1212_p6 = por %p200_p3, %p44_p0  ;;  %s1129_s10 = smov [#allocation5]  }
   0xb   : > { %s1454_s30 = scalar_select %p1207_p4, 1, 0 }
   0xc   : > { %s1455_s8 = scalar_select %p1212_p6, 1, 0 }
   0xd   : > { %p1217_p8 = pnand %p697_p5, %p207_p7  ;;  %s219_s11 = sshll.u32 %s1129_s10, 4  ;;  %s1221_s11 = int_to_ptr.vmem [resolvable:$true] %s219_s11 }
   0xe   : > { %s1130_s13 = smov [#allocation7]   ;;  %s971_s17 = scalar_lea.hbm %s1443_s1, 2048 }
   0xf   : > { %p912_p9 = pneg %p1217_p8  ;;  %s238_s14 = sshll.u32 %s1130_s13, 4  ;;  %s1232_s14 = int_to_ptr.vmem [resolvable:$true] %s238_s14 }
  0x10   : > { %p972_p12 = scmp.ne.s32.totalorder %s1443_s1, %s971_s17  ;;  %p978_p5 = scmp.lt.u32.totalorder %s971_s17, %s1443_s1 }
  0x11   : > { %p1228_p11 = pnand %p912_p9, %p1450_p1 }
  0x13   : > { %p973_p13 = pneg %p1228_p11 }
  0x15   : > { %p974_p0 = pnand %p973_p13, %p972_p12 }
  0x17   : > { %p975_p3 = pneg %p974_p0 }
  0x19   : > { %p980_p7 = pnand %p978_p5, %p975_p3 }
  0x1b   : > { %983 = shalt.err (!%p980_p7)
}
  0x1c   : > { %s984_s22 = scalar_lea.vmem %s1221_s11, 2048  ;;  %p992_p2 = scmp.lt.s32.totalorder %s1221_s11, %s1221_s11 }
  0x1d   : > { %p985_p9 = scmp.ne.s32.totalorder %s1221_s11, %s984_s22  ;;  %p993_p12 = scmp.lt.s32.totalorder %s984_s22, %s984_s22 }
  0x1f   : > { %p987_p10 = pnand %p985_p9, %p973_p13  ;;  %p994_p0 = por %p993_p12, %p992_p2 }
  0x21   : > { %p988_p1 = pneg %p987_p10 }
  0x23   : > { %p995_p6 = pnand %p994_p0, %p988_p1 }
  0x25   : > { %998 = shalt.err (!%p995_p6)
}
  0x26   : > { %s1451_s23 = smov 128   ;;  %s1132_s29 = smov 8  }
  0x27   : > { %915 = dma.hbm_to_vmem [thread:$0]  (!%p1228_p11), %s1443_s1, 2048, %s1221_s11, [#allocation6], %s1451_s23, %s1451_s23, %s1132_s29  }
  0x28   : > { %s999_s17 = scalar_lea.hbm %s1446_s4, 2048 }
  0x29   : > { %p1000_p1 = scmp.ne.s32.totalorder %s1446_s4, %s999_s17  ;;  %p1006_p10 = scmp.lt.u32.totalorder %s999_s17, %s1446_s4 }
  0x2b   : > { %p1002_p2 = pnand %p1000_p1, %p973_p13 }
  0x2d   : > { %p1003_p6 = pneg %p1002_p2 }
  0x2f   : > { %p1008_p3 = pnand %p1006_p10, %p1003_p6 }
  0x31   : > { %1011 = shalt.err (!%p1008_p3)
}
  0x32   : > { %s1012_s11 = scalar_lea.vmem %s1232_s14, 2048  ;;  %p1020_p12 = scmp.lt.s32.totalorder %s1232_s14, %s1232_s14 }
  0x33   : > { %p1013_p5 = scmp.ne.s32.totalorder %s1232_s14, %s1012_s11  ;;  %p1021_p0 = scmp.lt.s32.totalorder %s1012_s11, %s1012_s11 }
  0x35   : > { %p1015_p7 = pnand %p1013_p5, %p973_p13  ;;  %p1022_p1 = por %p1021_p0, %p1020_p12 }
  0x37   : > { %p1016_p9 = pneg %p1015_p7 }
  0x39   : > { %p1023_p2 = pnand %p1022_p1, %p1016_p9 }
  0x3b   : > { %1026 = shalt.err (!%p1023_p2)
}
  0x3c   : > { %918 = dma.hbm_to_vmem [thread:$0]  (!%p1228_p11), %s1446_s4, 2048, %s1232_s14, [#allocation6], %s1451_s23, %s1451_s23, %s1132_s29  }
  0x3d   : > { %s1293_s12 = sadd.s32 1, %s1127_s27   ;;  %s31_s13 = sadd.s32 1, %s1123_s26 }
  0x3e   : > { %s28_s15 = ssub.s32 %s1127_s27, %s1293_s12  ;;  %p38_p13 = scmp.ne.s32.totalorder %s1123_s26, %s1119_s25 }
  0x3f   : > { %p29_p6 = scmp.eq.s32.totalorder %s28_s15, 0  ;;  %p39_p10 = scmp.eq.s32.totalorder %s1127_s27, 0 }
  0x40   : > { %p1458_p3 = scmp.eq.s32.totalorder %s1198_s28, 1  ;;  %p929_p7 = scmp.lt.s32.totalorder %s1127_s27, 2 }
  0x41   : > { %s1309_s17 = scalar_select %p29_p6, %s1123_s26, %s31_s13  }
  0x42   : > { %p1303_p5 = por %p1458_p3, %p38_p13  ;;  %p40_p9 = por %p39_p10, %p38_p13 }
  0x43   : > { %s258_s18 = sand.u32 1, %s1123_s26   ;;  %s718_s14 = sshll.u32 %s1127_s27, 9 }
  0x44   : > { %s1459_s16 = scalar_select %p1303_p5, 1, 0 }
  0x45   : > { %s701_s19 = sshll.u32 %s258_s18, 5  ;;  %s1316_s11 = scalar_lea.hbm %s1442_s0, %s718_s14 }
  0x46   : > { %s262_s22 = scalar_lea.vmem [#allocation2], %s701_s19  ;;  %p1320_p11 = pnand %p929_p7, %p40_p9 }
  0x47   : > { %s269_s10 = sshll.u32 %s262_s22, 4  ;;  %s1324_s15 = scalar_lea.sflag [#allocation3], %s258_s18  ;;  %s1318_s10 = int_to_ptr.vmem [resolvable:$true] %s269_s10 }
  0x48   : > { %s1027_s23 = scalar_lea.hbm %s1316_s11, 512  ;;  %p1029_p0 = pneg %p1320_p11 }
  0x49   : > { %p1028_p12 = scmp.ne.s32.totalorder %s1316_s11, %s1027_s23  ;;  %s1032_s20 = scalar_lea.hbm %s1442_s0, 1024 }
  0x4a   : > { %p1033_p13 = scmp.lt.u32.totalorder %s1316_s11, %s1442_s0  ;;  %p1034_p6 = scmp.lt.u32.totalorder %s1032_s20, %s1027_s23 }
  0x4b   : > { %p1030_p1 = pnand %p1029_p0, %p1028_p12  ;;  %p1036_p3 = scmp.lt.u32.totalorder %s1027_s23, %s1316_s11 }
  0x4c   : > { %p1035_p10 = por %p1034_p6, %p1033_p13 }
  0x4d   : > { %p1031_p2 = pneg %p1030_p1 }
  0x4e   : > { %p1037_p7 = por %p1036_p3, %p1035_p10 }
  0x50   : > { %p1038_p9 = pnand %p1037_p7, %p1031_p2 }
  0x52   : > { %1041 = shalt.err (!%p1038_p9)
}
  0x53   : > { %s1042_s18 = scalar_lea.vmem %s1318_s10, 512  ;;  %s1133_s19 = smov [#allocation2]  }
  0x54   : > { %p1043_p12 = scmp.ne.s32.totalorder %s1318_s10, %s1042_s18  ;;  %s1047_s14 = sshll.u32 %s1133_s19, 4  ;;  %s1048_s14 = int_to_ptr.vmem [resolvable:$false] %s1047_s14 }
  0x55   : > { %s1049_s21 = scalar_lea.vmem %s1048_s14, 1024  ;;  %p1050_p4 = scmp.lt.s32.totalorder %s1318_s10, %s1048_s14 }
  0x56   : > { %p1045_p1 = pnand %p1043_p12, %p1029_p0  ;;  %p1051_p13 = scmp.lt.s32.totalorder %s1049_s21, %s1042_s18 }
  0x58   : > { %p1046_p5 = pneg %p1045_p1  ;;  %p1052_p6 = por %p1051_p13, %p1050_p4 }
  0x5a   : > { %p1053_p10 = pnand %p1052_p6, %p1046_p5 }
  0x5c   : > { %1056 = shalt.err (!%p1053_p10)
}
  0x5d   : > { %s1461_s23 = smov 128   ;;  %281 = sbr.rel (%p1217_p8) target bundleno = 597 (0x255), region = 48 }
  0x5e   : > { %922 = dma.hbm_to_vmem [thread:$0]  (!%p1320_p11), %s1316_s11, 512, %s1318_s10, %s1324_s15, %s1461_s23, %s1461_s23, %s1132_s29  }
  0x5f   : > { %s1358_s20 = sand.u32 (!%p1217_p8), 1, %s1119_s25   ;;  %p1462_p4 = scmp.ne.s32.totalorder (!%p1217_p8), %s1454_s30, 0 }
  0x60   : > { %s705_s22 = sshll.u32 (!%p1217_p8), %s1358_s20, 5  ;;  %s284_s18 = scalar_lea.sflag (!%p1217_p8), [#allocation3], %s1358_s20 }
  0x61   : > { %s1364_s13 = scalar_lea.vmem (!%p1217_p8), [#allocation2], %s705_s22 }
  0x64   : > { %1102 = dma.done.wait (%p1462_p4), %s284_s18, 512  }
  0x65   : > { %1104 = vsyncadd (%p1462_p4), %s284_s18, 4294966784  ;;  %p1463_p5 = scmp.eq.s32.totalorder %s1198_s28, 0 }
  0x67   : > { %1106 = dma.done.wait (%p1463_p5), [#allocation6], 4096   ;;  %p1464_p8 = pmov %p1463_p5 }
  0x68   : > { %v332_v0 = vld [vmem:[#allocation5] sm:$0xff]  ;;  %v333_v1 = vld [vmem:[#allocation5 + $0x8] sm:$0xff]  ;;  %v334_v2 = vld [vmem:[#allocation5 + $0x10] sm:$0xff]  ;;  %s325_s21 = scalar_lea.vmem [#allocation8], %s705_s22  ;;  %s719_s18 = sshll.u32 %s1198_s28, 9 }
  0x69   : > { %1108 = vsyncadd (%p1464_p8), [#allocation6], 4294963200  ;;  %v836_v3 = vpack.c.bf16 %v333_v1, %v332_v0  ;;  %v335_v4 = vld [vmem:[#allocation5 + $0x18] sm:$0xff]  ;;  %v336_v6 = vld [vmem:[#allocation5 + $0x20] sm:$0xff]  ;;  %s604_s23 = sshll.u32 %s325_s21, 4  ;;  %s1398_s30 = scalar_lea.hbm %s1449_s7, %s719_s18  ;;  %s1393_s23 = int_to_ptr.vmem [resolvable:$true] %s604_s23 }
  0x6a   : > { %v840_v5 = vpack.c.bf16 %v335_v4, %v334_v2  ;;  %v337_v7 = vld [vmem:[#allocation5 + $0x28] sm:$0xff]  ;;  %v328_v9 = vld [vmem:[%s1364_s13] sm:$0xff]  ;;  %v338_v10 = vld [vmem:[#allocation5 + $0x30] sm:$0xff]  ;;  %s591_s9 = scalar_lea.sflag [#allocation4], %s1358_s20  ;;  %s1057_s28 = scalar_lea.vmem %s1393_s23, 512 }
  0x6b   : > { %837 = vmatprep.subr.bf16.mxu0 %v836_v3  ;;  %v844_v8 = vpack.c.bf16 %v337_v7, %v336_v6  ;;  %v339_v11 = vld [vmem:[#allocation5 + $0x38] sm:$0xff]  ;;  %792 = vmatprep.mubr.f32.mxu0 %v328_v9  ;;  %v459_v12 = vld [vmem:[#allocation7] sm:$0xff]  ;;  %v460_v13 = vld [vmem:[#allocation7 + $0x8] sm:$0xff]  ;;  %p1058_p11 = scmp.ne.s32.totalorder %s1393_s23, %s1057_s28  ;;  %p1465_p0 = scmp.ne.s32.totalorder %s1459_s16, 0 }
  0x6c   : > { %839 = vmatpush3.bf16.msra.mxu0 %v836_v3  ;;  %v461_v14 = vld [vmem:[#allocation7 + $0x10] sm:$0xff]  ;;  %v462_v15 = vld [vmem:[#allocation7 + $0x18] sm:$0xff]  ;;  %v868_v16 = vpack.c.bf16 %v460_v13, %v459_v12  ;;  %v848_v18 = vpack.c.bf16 %v339_v11, %v338_v10  ;;  %v463_v19 = vld [vmem:[#allocation7 + $0x20] sm:$0xff]  ;;  %s1134_s29 = smov [#allocation8]  }
  0x6d   : > { %841 = vmatprep.subr.bf16.mxu0 %v840_v5  ;;  %v872_v17 = vpack.c.bf16 %v462_v15, %v461_v14  ;;  %v464_v20 = vld [vmem:[#allocation7 + $0x28] sm:$0xff]  ;;  %v340_v21 = vld [vmem:[#allocation5 + $0x40] sm:$0xff]  ;;  %v465_v25 = vld [vmem:[#allocation7 + $0x30] sm:$0xff]  ;;  %p1059_p2 = pnand %p1058_p11, %p1465_p0  ;;  %s1061_s11 = sshll.u32 %s1134_s29, 4  ;;  %s1062_s11 = int_to_ptr.vmem [resolvable:$false] %s1061_s11 }
  0x6e   : > { %v341_v22 = vld [vmem:[#allocation5 + $0x48] sm:$0xff]  ;;  %869 = vmatprep.subr.bf16.mxu1 %v868_v16  ;;  %v876_v23 = vpack.c.bf16 %v464_v20, %v463_v19  ;;  %v466_v26 = vld [vmem:[#allocation7 + $0x38] sm:$0xff]  ;;  %v342_v27 = vld [vmem:[#allocation5 + $0x50] sm:$0xff]  ;;  %s1063_s10 = scalar_lea.vmem %s1062_s11, 1024  ;;  %p1064_p7 = scmp.lt.s32.totalorder %s1393_s23, %s1062_s11 }
  0x6f   : > { %871 = vmatpush3.bf16.msra.mxu1 %v868_v16  ;;  %v852_v24 = vpack.c.bf16 %v341_v22, %v340_v21  ;;  %v343_v28 = vld [vmem:[#allocation5 + $0x58] sm:$0xff]  ;;  %v880_v29 = vpack.c.bf16 %v466_v26, %v465_v25  ;;  %v467_v31 = vld [vmem:[#allocation7 + $0x40] sm:$0xff]  ;;  %v468_v32 = vld [vmem:[#allocation7 + $0x48] sm:$0xff]  ;;  %p1060_p3 = pneg %p1059_p2  ;;  %p1065_p9 = scmp.lt.s32.totalorder %s1063_s10, %s1057_s28 }
  0x70   : > { %843 = vmatpush3.bf16.msra.mxu0 %v840_v5  ;;  %873 = vmatprep.subr.bf16.mxu1 %v872_v17  ;;  %v856_v30 = vpack.c.bf16 %v343_v28, %v342_v27  ;;  %v344_v33 = vld [vmem:[#allocation5 + $0x60] sm:$0xff]  ;;  %v345_v34 = vld [vmem:[#allocation5 + $0x68] sm:$0xff]  ;;  %v884_v35 = vpack.c.bf16 %v468_v32, %v467_v31  ;;  %v469_v37 = vld [vmem:[#allocation7 + $0x50] sm:$0xff] }
  0x71   : > { %845 = vmatprep.subr.bf16.mxu0 %v844_v8  ;;  %v860_v36 = vpack.c.bf16 %v345_v34, %v344_v33  ;;  %v470_v38 = vld [vmem:[#allocation7 + $0x58] sm:$0xff]  ;;  %v346_v39 = vld [vmem:[#allocation5 + $0x70] sm:$0xff]  ;;  %v329_v43 = vld [vmem:[%s1364_s13 + $0x8] sm:$0xff]  ;;  %p1066_p12 = por %p1065_p9, %p1064_p7 }
  0x72   : > { %v347_v40 = vld [vmem:[#allocation5 + $0x78] sm:$0xff]  ;;  %v888_v41 = vpack.c.bf16 %v470_v38, %v469_v37  ;;  %v330_v44 = vld [vmem:[%s1364_s13 + $0x10] sm:$0xff]  ;;  %v471_v46 = vld [vmem:[#allocation7 + $0x60] sm:$0xff] }
  0x73   : > { %875 = vmatpush3.bf16.msra.mxu1 %v872_v17  ;;  %v864_v42 = vpack.c.bf16 %v347_v40, %v346_v39  ;;  %v331_v45 = vld [vmem:[%s1364_s13 + $0x18] sm:$0xff]  ;;  %v472_v47 = vld [vmem:[#allocation7 + $0x68] sm:$0xff]  ;;  %v473_v49 = vld [vmem:[#allocation7 + $0x70] sm:$0xff]  ;;  %p1067_p1 = pnand %p1066_p12, %p1060_p3 }
  0x74   : > { %847 = vmatpush3.bf16.msra.mxu0 %v844_v8  ;;  %877 = vmatprep.subr.bf16.mxu1 %v876_v23  ;;  %v892_v48 = vpack.c.bf16 %v472_v47, %v471_v46  ;;  %v474_v50 = vld [vmem:[#allocation7 + $0x78] sm:$0xff]  ;;  %v709_v52 = vld [vmem:[%s1444_s2] ss:$0 sm:$0xff] }
  0x75   : > { %849 = vmatprep.subr.bf16.mxu0 %v848_v18  ;;  %v896_v51 = vpack.c.bf16 %v474_v50, %v473_v49  ;;  %v710_v54 = vld [vmem:[%s1445_s3] ss:$0 sm:$0xff] }
  0x76   : > { %v711_v6 = vld [vmem:[%s1447_s5] ss:$0 sm:$0xff] }
  0x77   : > { %879 = vmatpush3.bf16.msra.mxu1 %v876_v23  ;;  %v712_v8 = vld [vmem:[%s1448_s6] ss:$0 sm:$0xff] }
  0x78   : > { %851 = vmatpush3.bf16.msra.mxu0 %v848_v18  ;;  %881 = vmatprep.subr.bf16.mxu1 %v880_v29 }
  0x79   : > { %853 = vmatprep.subr.bf16.mxu0 %v852_v24 }
  0x7b   : > { %883 = vmatpush3.bf16.msra.mxu1 %v880_v29 }
  0x7c   : > { %855 = vmatpush3.bf16.msra.mxu0 %v852_v24  ;;  %885 = vmatprep.subr.bf16.mxu1 %v884_v35 }
  0x7d   : > { %857 = vmatprep.subr.bf16.mxu0 %v856_v30 }
  0x7f   : > { %887 = vmatpush3.bf16.msra.mxu1 %v884_v35 }
  0x80   : > { %859 = vmatpush3.bf16.msra.mxu0 %v856_v30  ;;  %889 = vmatprep.subr.bf16.mxu1 %v888_v41 }
  0x81   : > { %861 = vmatprep.subr.bf16.mxu0 %v860_v36 }
  0x83   : > { %891 = vmatpush3.bf16.msra.mxu1 %v888_v41 }
  0x84   : > { %863 = vmatpush3.bf16.msra.mxu0 %v860_v36  ;;  %893 = vmatprep.subr.bf16.mxu1 %v892_v48 }
  0x85   : > { %865 = vmatprep.subr.bf16.mxu0 %v864_v42 }
  0x87   : > { %895 = vmatpush3.bf16.msra.mxu1 %v892_v48 }
  0x88   : > { %867 = vmatpush3.bf16.msra.mxu0 %v864_v42  ;;  %897 = vmatprep.subr.bf16.mxu1 %v896_v51 }
  0x8b   : > { %793 = vmatmul.mubr.f32.vlgmr.msra.gmra.mrb[0].mxu0 %v329_v43  ;;  %899 = vmatpush3.bf16.msra.mxu1 %v896_v51 }
  0x8c   : > { %795 = vmatprep.mubr.f32.mxu0 %v330_v44 }
  0x8f   : > { %796 = vmatmul.mubr.f32.gmra.mrb[2].mxu0 %v331_v45 }
 0x15e   : > { %v794_v53 = vpop.f32.mrb[0].mxu0 }
 0x15f   : > { %v441_v55 = vmul.f32 %v794_v53, %v709_v52  ;;  %v414_v56 = vpop.f32.mrb[1].mxu0 }
 0x160   : > { %v440_v57 = vmul.f32 %v709_v52, %v414_v56 }
 0x161   : > { %v452_v58 = vadd.f32 %v710_v54, %v441_v55 }
 0x162   : > { %v797_v59 = vpop.f32.mrb[2].mxu0  ;;  %v451_v60 = vadd.f32 %v710_v54, %v440_v57 }
 0x163   : > { %v443_v61 = vmul.f32 %v797_v59, %v709_v52  ;;  %v424_v62 = vpop.f32.mrb[3].mxu0  ;;  %v456_v1 = vmax.f32 %v452_v58, 0.0 }
 0x164   : > { %v442_v63 = vmul.f32 %v709_v52, %v424_v62  ;;  %v455_v0 = vmax.f32 %v451_v60, 0.0 }
 0x165   : > { %v454_v2 = vadd.f32 %v710_v54, %v443_v61 }
 0x166   : > { %v453_v3 = vadd.f32 %v710_v54, %v442_v63  ;;  %830 = vmatprep.mubr.f32.mxu1 %v455_v0 }
 0x167   : > { %831 = vmatmul.mubr.f32.vlgmr.msra.gmra.mrb[0].mxu1 %v456_v1  ;;  %v458_v5 = vmax.f32 %v454_v2, 0.0 }
 0x168   : > { %v457_v4 = vmax.f32 %v453_v3, 0.0 }
 0x16a   : > { %833 = vmatprep.mubr.f32.mxu1 %v457_v4 }
 0x16b   : > { %834 = vmatmul.mubr.f32.gmra.mrb[2].mxu1 %v458_v5 }
 0x23a   : > { %v832_v7 = vpop.f32.mrb[0].mxu1 }
 0x23b   : > { %v568_v9 = vmul.f32 %v832_v7, %v711_v6  ;;  %v541_v10 = vpop.f32.mrb[1].mxu1 }
 0x23c   : > { %v567_v11 = vmul.f32 %v711_v6, %v541_v10 }
 0x23d   : > { %v579_v12 = vadd.f32 %v712_v8, %v568_v9 }
 0x23e   : > { %v578_v13 = vadd.f32 %v712_v8, %v567_v11  ;;  %v835_v14 = vpop.f32.mrb[2].mxu1 }
 0x23f   : > { %v583_v15 = vmax.f32 %v579_v12, 0.0  ;;  %v570_v16 = vmul.f32 %v835_v14, %v711_v6  ;;  %v551_v17 = vpop.f32.mrb[3].mxu1 }
 0x240   : > { %v582_v18 = vmax.f32 %v578_v13, 0.0  ;;  %v569_v19 = vmul.f32 %v711_v6, %v551_v17 }
 0x241   : > { %587 = vst [vmem:[%s325_s21 + $0x8] sm:$0xff] %v583_v15  ;;  %v581_v20 = vadd.f32 %v712_v8, %v570_v16 }
 0x242   : > { %586 = vst [vmem:[%s325_s21] sm:$0xff] %v582_v18  ;;  %v580_v21 = vadd.f32 %v712_v8, %v569_v19 }
 0x243   : > { %v585_v22 = vmax.f32 %v581_v20, 0.0 }
 0x244   : > { %v584_v23 = vmax.f32 %v580_v21, 0.0 }
 0x245   : > { %589 = vst [vmem:[%s325_s21 + $0x18] sm:$0xff] %v585_v22 }
 0x246   : > { %588 = vst [vmem:[%s325_s21 + $0x10] sm:$0xff] %v584_v23 }
 0x247   : > { %1070 = shalt.err (!%p1067_p1)
}
 0x248   : > { %s1071_s15 = scalar_lea.hbm %s1398_s30, 512  ;;  %s1075_s21 = scalar_lea.hbm %s1449_s7, 1024 }
 0x249   : > { %p1072_p13 = scmp.ne.s32.totalorder %s1398_s30, %s1071_s15  ;;  %p1076_p4 = scmp.lt.u32.totalorder %s1398_s30, %s1449_s7 }
 0x24a   : > { %p1077_p5 = scmp.lt.u32.totalorder %s1075_s21, %s1071_s15  ;;  %p1079_p11 = scmp.lt.u32.totalorder %s1071_s15, %s1398_s30 }
 0x24b   : > { %p1073_p6 = pnand %p1072_p13, %p1465_p0 }
 0x24c   : > { %p1078_p8 = por %p1077_p5, %p1076_p4 }
 0x24d   : > { %p1074_p10 = pneg %p1073_p6 }
 0x24e   : > { %p1080_p2 = por %p1079_p11, %p1078_p8 }
 0x250   : > { %p1081_p3 = pnand %p1080_p2, %p1074_p10 }
 0x252   : > { %1084 = shalt.err (!%p1081_p3)
}
 0x253   : > { %s1135_s22 = smov 128   ;;  %s1136_s28 = smov 8  }
 0x254   : > { %910 = dma.vmem_to_hbm [thread:$0]  (%p1465_p0), %s1393_s23, 512, %s1398_s30, %s591_s9, %s1135_s22, %s1135_s22, %s1136_s28  }
 0x255 PF: > { %s619_s29 = sand.u32 1, %s1115_s24   ;;  %p1466_p7 = scmp.ne.s32.totalorder %s1455_s8, 0 }
 0x256   : > { %p1467_p9 = scmp.ge.s32.totalorder %s1127_s27, 2  ;;  %s620_s11 = scalar_lea.sflag [#allocation4], %s619_s29 }
 0x258   : > { %p924_p12 = pnand %p1467_p9, %p1466_p7 }
 0x25a   : > { %1110 = dma.done.wait (!%p924_p12), %s620_s11, 512  }
 0x25b   : > { %1112 = vsyncadd (!%p924_p12), %s620_s11, 4294966784  ;;  %p21_p1 = scmp.ge.s32.totalorder %s1293_s12, 4   ;;  %s1468_s24 = smov %s1119_s25 }
 0x25c   : > { %s1469_s25 = smov %s1123_s26  ;;  %s1470_s26 = smov %s1309_s17 }
 0x25d   : > { %s1471_s27 = smov %s1293_s12  ;;  %23 = sbr.rel (!%p21_p1) target bundleno = 6 (0x6), region = 101 }
 0x264   :  { %625 = vsyncpa [#allocation3], 1 }
 0x265   :  { %627 = vsyncpa [#allocation3 + $0x1], 1 }
 0x266   :  { %628 = vsyncpa [#allocation6], 1 }
 0x267   :  { %629 = vsyncpa [#allocation4], 1 }
 0x268   :  { %631 = vsyncpa [#allocation4 + $0x1], 1 }

</bundles_post_ra>
